<compile_context>
chip_gen: v5e
topology: v5e:2x2
jax: 0.10.0
libtpu: 0.0.40
codegen_flags: <defaults>
</compile_context>

<pallas_src>
import functools

import numpy as np
import jax
import jax.numpy as jnp
from jax.experimental import pallas as pl
from jax.experimental.pallas import tpu as pltpu


def _mixup_kernel(perm_ref, x_ref, x_hbm_ref, o_ref, gbuf_ref, sem_ref, *,
                  lam, one_minus_lam, tm):
    # perm_ref : scalar-prefetched permutation, int32 in SMEM
    # x_ref    : (TM, F) direct tile of rows [base, base+TM)
    # x_hbm_ref: full (N_pad, F) array left in HBM (memory_space=pl.ANY)
    # o_ref    : (TM, F) output tile
    # gbuf_ref : (TM, F) VMEM scratch holding the gathered rows x[perm[...]]
    # sem_ref  : (1,) DMA semaphore shared by all per-row gather copies
    base = pl.program_id(0) * tm

    # Issue one async copy per gathered row: x[perm[base + r]] -> gbuf[r].
    @pl.loop(0, tm)
    def _issue(r):
        src = perm_ref[base + r]
        pltpu.make_async_copy(
            x_hbm_ref.at[pl.ds(src, 1)],
            gbuf_ref.at[pl.ds(r, 1)],
            sem_ref.at[0],
        ).start()

    # Drain: one wait per issued copy, with an identically-shaped descriptor
    # (src index is only used for shape/size bookkeeping).
    @pl.loop(0, tm)
    def _drain(r):
        pltpu.make_async_copy(
            x_hbm_ref.at[pl.ds(0, 1)],
            gbuf_ref.at[pl.ds(r, 1)],
            sem_ref.at[0],
        ).wait()

    # Elementwise mix on full (TM, F) vreg-dense tiles (VPU).
    o_ref[...] = x_ref[...] * lam + one_minus_lam * gbuf_ref[...]


def _choose_tm(n, f, dtype_bytes, vmem_tile_budget=24 * 1024 * 1024):
    """Pick rows-per-block: multiple of 8, capped so ~5 live (TM, F) tiles
    (2x double-buffered input, 2x double-buffered output, 1x gather scratch)
    stay well inside VMEM on every generation (v5e 16 MiB scoped default,
    v7x 64 MiB physical)."""
    tm_cap = max(8, vmem_tile_budget // (5 * f * dtype_bytes))
    tm = min(256, tm_cap)
    tm = max(8, (tm // 8) * 8)
    n8 = ((n + 7) // 8) * 8
    return min(tm, n8)


def mixup_pallas(x, lam, perm, *, tm=None):
    """x: [N, F] float32, lam: python float, perm: [N] int32 permutation."""
    N, F = x.shape
    assert F % 128 == 0, "feature dim must be a multiple of 128 for this kernel"
    dtype_bytes = jnp.dtype(x.dtype).itemsize

    if tm is None:
        tm = _choose_tm(N, F, dtype_bytes)
    tm = max(8, (int(tm) // 8) * 8)

    # Pad rows up to a multiple of TM; pad perm with identity indices so all
    # gather DMAs stay in bounds.
    n_pad = ((N + tm - 1) // tm) * tm
    perm = perm.astype(jnp.int32)
    if n_pad != N:
        x_pad = jnp.zeros((n_pad, F), x.dtype).at[:N].set(x)
        perm_pad = jnp.concatenate(
            [perm, jnp.arange(N, n_pad, dtype=jnp.int32)])
    else:
        x_pad = x
        perm_pad = perm

    lam_f = float(lam)
    kernel = functools.partial(
        _mixup_kernel, lam=lam_f, one_minus_lam=1.0 - lam_f, tm=tm)

    # VMEM: ~5 live (TM, F) tiles plus slack; keep the explicit limit well
    # under v7x's 64 MiB physical VMEM.
    vmem_limit = int(min(
        64 * 1024 * 1024,
        max(16 * 1024 * 1024, 7 * tm * F * dtype_bytes + (2 << 20))))

    out = pl.pallas_call(
        kernel,
        out_shape=jax.ShapeDtypeStruct((n_pad, F), x.dtype),
        grid_spec=pltpu.PrefetchScalarGridSpec(
            num_scalar_prefetch=1,            # perm -> SMEM
            grid=(n_pad // tm,),
            in_specs=[
                # direct rows [i*TM, (i+1)*TM), lane-dense (TM, F) tile
                pl.BlockSpec((tm, F), lambda i, perm: (i, 0)),
                # same array left in HBM for the manual per-row gather
                pl.BlockSpec(memory_space=pl.ANY),
            ],
            out_specs=pl.BlockSpec((tm, F), lambda i, perm: (i, 0)),
            scratch_shapes=[
                pltpu.VMEM((tm, F), x.dtype),      # gathered rows
                pltpu.SemaphoreType.DMA((1,)),     # gather DMA semaphore
            ],
        ),
        compiler_params=pltpu.CompilerParams(
            dimension_semantics=("parallel",),     # rows independent; 2 TCs on v7x
            vmem_limit_bytes=vmem_limit,
        ),
        cost_estimate=pl.CostEstimate(
            flops=3 * N * F,
            transcendentals=0,
            bytes_accessed=3 * N * F * dtype_bytes,  # x read twice + out written
        ),
    )(perm_pad, x_pad, x_pad)
    return out[:N]


def build_segment_perm(ptr, n, seed=0):
    """Deterministic stand-in for the host-side np.random.shuffle in the
    reference: per-segment shuffle of row indices."""
    # TODO(synk): np.random.shuffle in the reference is host RNG with no Pallas
    # equivalent; we generate an equivalent (deterministic) permutation here.
    if ptr is None:
        ptr_list = [0, n]
    else:
        ptr_list = np.asarray(ptr).tolist()
    perm = np.arange(n)
    rng = np.random.default_rng(seed)
    tracker = ptr_list[0]
    for p in ptr_list[1:]:
        seg = np.arange(tracker, p)
        rng.shuffle(seg)
        perm[tracker:p] = seg
        tracker = p
    return jnp.asarray(perm, dtype=jnp.int32)


if __name__ == "__main__":
    key = jax.random.PRNGKey(0)

    # Case 1: small graph, two segments, single grid step.
    N, F = 8, 256
    x = jax.random.normal(key, (N, F), dtype=jnp.float32)
    lam = 0.7
    ptr = jnp.array([0, 4, 8], dtype=jnp.int32)   # segments [0,4) and [4,8)
    perm = build_segment_perm(ptr, N, seed=0)
    out = mixup_pallas(x, lam, perm)
    jax.block_until_ready(out)
    ref = x * lam + (1.0 - lam) * x[perm]
    assert jnp.allclose(out, ref, atol=1e-6), "mismatch vs reference (case 1)"

    # Case 2: multiple grid steps + row-padding tail (N not a multiple of TM).
    N2, F2 = 20, 128
    x2 = jax.random.normal(jax.random.PRNGKey(1), (N2, F2), dtype=jnp.float32)
    lam2 = 0.3
    ptr2 = jnp.array([0, 7, 20], dtype=jnp.int32)
    perm2 = build_segment_perm(ptr2, N2, seed=1)
    out2 = mixup_pallas(x2, lam2, perm2, tm=8)
    jax.block_until_ready(out2)
    ref2 = x2 * lam2 + (1.0 - lam2) * x2[perm2]
    assert jnp.allclose(out2, ref2, atol=1e-6), "mismatch vs reference (case 2)"

    print("KERNEL_OK")
</pallas_src>

<mosaic_0001>
module attributes {stable_mosaic.version = 11 : i64} {
  func.func @_mixup_kernel(%arg0: i32, %arg1: memref<8xi32, #tpu.memory_space<smem>>, %arg2: memref<8x256xf32, #tpu.memory_space<vmem>>, %arg3: memref<8x256xf32, #tpu.memory_space<any>>, %arg4: memref<8x256xf32, #tpu.memory_space<vmem>>, %arg5: memref<8x256xf32, #tpu.memory_space<vmem>>, %arg6: memref<1x!tpu.dma_semaphore, #tpu.memory_space<semaphore_mem>>) attributes {dimension_semantics = [#tpu.dimension_semantics<parallel>], iteration_bounds = array<i64: 1>, scalar_prefetch = 1 : i64, scratch_operands = 2 : i64, tpu.core_type = #tpu.core_type<tc>, window_params = [{transform_indices = @transform_0, window_bounds = array<i64: 8, 256>}, {}, {transform_indices = @transform_2, window_bounds = array<i64: 8, 256>}]} {
    %c8_i32 = arith.constant 8 : i32
    %0 = arith.muli %arg0, %c8_i32 : i32
    %c0_i32 = arith.constant 0 : i32
    %c8_i32_0 = arith.constant 8 : i32
    %1 = arith.addi %c0_i32, %c8_i32_0 : i32
    %c1_i32 = arith.constant 1 : i32
    scf.for %arg7 = %c0_i32 to %1 step %c1_i32  : i32 {
      %c1_i32_12 = arith.constant 1 : i32
      %11 = arith.muli %arg7, %c1_i32_12 : i32
      %c0_i32_13 = arith.constant 0 : i32
      %12 = arith.addi %c0_i32_13, %11 : i32
      %13 = arith.addi %0, %12 : i32
      %14 = arith.index_cast %13 : i32 to index
      %15 = memref.load %arg1[%14] : memref<8xi32, #tpu.memory_space<smem>>
      %c0_i32_14 = arith.constant 0 : i32
      %c0_i32_15 = arith.constant 0 : i32
      %16 = tpu.memref_slice %arg3[%15, %c0_i32_15] : memref<8x256xf32, #tpu.memory_space<any>> -> memref<1x256xf32, #tpu.memory_space<any>>
      %c0_i32_16 = arith.constant 0 : i32
      %17 = tpu.memref_slice %arg5[%12, %c0_i32_16] : memref<8x256xf32, #tpu.memory_space<vmem>> -> memref<1x256xf32, #tpu.memory_space<vmem>>
      %18 = tpu.memref_slice %arg6[%c0_i32_14] : memref<1x!tpu.dma_semaphore, #tpu.memory_space<semaphore_mem>> -> memref<1x!tpu.dma_semaphore, #tpu.memory_space<semaphore_mem>>
      %19 = tpu.memref_squeeze %18 : memref<1x!tpu.dma_semaphore, #tpu.memory_space<semaphore_mem>> -> memref<!tpu.dma_semaphore, #tpu.memory_space<semaphore_mem>>
      tpu.enqueue_dma source(%16 : memref<1x256xf32, #tpu.memory_space<any>>) target(%17 : memref<1x256xf32, #tpu.memory_space<vmem>>) target_semaphore(%19 : memref<!tpu.dma_semaphore, #tpu.memory_space<semaphore_mem>>)
    }
    %c8_i32_1 = arith.constant 8 : i32
    %c0_i32_2 = arith.constant 0 : i32
    %c8_i32_3 = arith.constant 8 : i32
    %2 = arith.addi %c0_i32_2, %c8_i32_3 : i32
    %c1_i32_4 = arith.constant 1 : i32
    scf.for %arg7 = %c0_i32_2 to %2 step %c1_i32_4  : i32 {
      %c1_i32_12 = arith.constant 1 : i32
      %11 = arith.muli %arg7, %c1_i32_12 : i32
      %c0_i32_13 = arith.constant 0 : i32
      %12 = arith.addi %c0_i32_13, %11 : i32
      %c0_i32_14 = arith.constant 0 : i32
      %c0_i32_15 = arith.constant 0 : i32
      %c0_i32_16 = arith.constant 0 : i32
      %13 = tpu.memref_slice %arg3[%c0_i32_15, %c0_i32_16] : memref<8x256xf32, #tpu.memory_space<any>> -> memref<1x256xf32, #tpu.memory_space<any>>
      %c0_i32_17 = arith.constant 0 : i32
      %14 = tpu.memref_slice %arg5[%12, %c0_i32_17] : memref<8x256xf32, #tpu.memory_space<vmem>> -> memref<1x256xf32, #tpu.memory_space<vmem>>
      %15 = tpu.memref_slice %arg6[%c0_i32_14] : memref<1x!tpu.dma_semaphore, #tpu.memory_space<semaphore_mem>> -> memref<1x!tpu.dma_semaphore, #tpu.memory_space<semaphore_mem>>
      %16 = tpu.memref_squeeze %15 : memref<1x!tpu.dma_semaphore, #tpu.memory_space<semaphore_mem>> -> memref<!tpu.dma_semaphore, #tpu.memory_space<semaphore_mem>>
      tpu.wait_dma2 semaphore(%16 : memref<!tpu.dma_semaphore, #tpu.memory_space<semaphore_mem>>) src(%13 : memref<1x256xf32, #tpu.memory_space<any>>) dst(%14 : memref<1x256xf32, #tpu.memory_space<vmem>>)
    }
    %c8_i32_5 = arith.constant 8 : i32
    %c0 = arith.constant 0 : index
    %c0_6 = arith.constant 0 : index
    %3 = vector.load %arg2[%c0, %c0_6] : memref<8x256xf32, #tpu.memory_space<vmem>>, vector<8x256xf32>
    %cst = arith.constant 0.699999988 : f32
    %4 = vector.broadcast %cst : f32 to vector<8x256xf32>
    %5 = arith.mulf %3, %4 : vector<8x256xf32>
    %c0_7 = arith.constant 0 : index
    %c0_8 = arith.constant 0 : index
    %6 = vector.load %arg5[%c0_7, %c0_8] : memref<8x256xf32, #tpu.memory_space<vmem>>, vector<8x256xf32>
    %cst_9 = arith.constant 3.000000e-01 : f32
    %7 = vector.broadcast %cst_9 : f32 to vector<8x256xf32>
    %8 = arith.mulf %7, %6 : vector<8x256xf32>
    %9 = arith.addf %5, %8 : vector<8x256xf32>
    %c0_10 = arith.constant 0 : index
    %c0_11 = arith.constant 0 : index
    %10 = vector.load %arg4[%c0_10, %c0_11] : memref<8x256xf32, #tpu.memory_space<vmem>>, vector<8x256xf32>
    tpu.vector_store %arg4[%c0_10, %c0_11], %9 {strides = array<i32>} : memref<8x256xf32, #tpu.memory_space<vmem>>, vector<8x256xf32>,
    return
  }
  func.func @transform_0(%arg0: i32, %arg1: memref<8xi32, #tpu.memory_space<smem>>) -> (i32, i32) {
    %c0_i32 = arith.constant 0 : i32
    %c0_i32_0 = arith.constant 0 : i32
    return %arg0, %c0_i32 : i32, i32
  }
  func.func @transform_2(%arg0: i32, %arg1: memref<8xi32, #tpu.memory_space<smem>>) -> (i32, i32) {
    %c0_i32 = arith.constant 0 : i32
    %c0_i32_0 = arith.constant 0 : i32
    return %arg0, %c0_i32 : i32, i32
  }
}

</mosaic_0001>

<bundles_post_ra>
// kernel: tpu_custom_call.1
= control target key start
LH: loop header
LB: loop body
LE: loop exit
PB: predicated region body
PF: predicated region fallthrough
CT: control target
= control target key end

     0   :  { %s252_s15 = smov [#allocation5]   ;;  %s317_s0 = inlined_call_operand.hbm [shape: s32[8], index: 0, kind: input, shape index: {}]   ;;  %s318_s1 = inlined_call_operand.hbm [shape: f32[8,256], index: 1, kind: input, shape index: {}]   ;;  %s319_s2 = inlined_call_operand.hbm [shape: f32[8,256], index: 2, kind: input, shape index: {}]   ;;  %s320_s3 = inlined_call_operand.hbm [shape: f32[8,256], index: 3, kind: output, shape index: {}]  }
   0x1   :  { %s9_s14 = sshll.u32 %s317_s0, 4  ;;  %s10_s14 = int_to_ptr.hbm [resolvable:$true] %s9_s14 }
   0x2   :  { %12 = dma.hbm_to_smem %s10_s14, 16, %s252_s15, [#allocation4] }
   0x3   :  { %236 = dma.done.wait [#allocation4], 16 }
   0x4   :  { %237 = vsyncadd [#allocation4], 4294967280 }
   0x5   :  { %15 = sfence }
   0x6   :  { %16 = vsyncpa [#allocation7], 0 }
   0x7   :  { %17 = vsyncpa [#allocation8], 0  ;;  %s23_s18 = sshll.u32 %s318_s1, 4  ;;  %s253_s19 = smov [#allocation6]   ;;  %s24_s18 = int_to_ptr.hbm [resolvable:$true] %s23_s18 }
   0x8   :  { %s25_s20 = sshll.u32 %s253_s19, 4  ;;  %s26_s20 = int_to_ptr.vmem [resolvable:$true] %s25_s20 }
   0x9   :  { %28 = dma.hbm_to_vmem [thread:$0]  %s24_s18, 256, %s26_s20, [#allocation7]  }
   0xa   :  { %238 = dma.done.wait [#allocation7], 256  }
   0xb   :  { %239 = vsyncadd [#allocation7], 4294967040  ;;  %s284_s0 = smov 0  }
   0xc LB: > { %s41_s21 = sld [smem:[#allocation5 + %s246_s0]]  ;;  %s47_s22 = sshrl.u32 %s246_s0, 3  ;;  %s246_s0 = sphi %s284_s0, %s39_s0  }
   0xd   : > { %s48_s1 = sand.u32 7, %s246_s0   ;;  %s121_s23 = sshll.u32 %s47_s22, 4 }
   0xe   : > { %s50_s24 = sadd.s32 %s121_s23, %s48_s1  ;;  %s184_s12 = scalar_lea.hbm %s319_s2, 16 }
   0xf   : > { %s51_s25 = scalar_lea.vmem [#allocation2], %s50_s24 }
  0x10   : > { %s292_s26 = sshll.u32 %s51_s25, 4  ;;  %s55_s26 = int_to_ptr.vmem [resolvable:$true] %s292_s26 }
  0x12   : > { %s42_s27 = sshrl.u32 %s41_s21, 3  ;;  %s43_s28 = sand.u32 7, %s41_s21  }
  0x13   : > { %s120_s29 = sshll.u32 %s42_s27, 4 }
  0x14   : > { %s45_s30 = sadd.s32 %s120_s29, %s43_s28 }
  0x15   : > { %s46_s6 = scalar_lea.hbm %s319_s2, %s45_s30 }
  0x16   : > { %s298_s7 = sshll.u32 %s46_s6, 4  ;;  %s53_s7 = int_to_ptr.hbm [resolvable:$true] %s298_s7 }
  0x17   : > { %s180_s8 = sshra.s32 %s53_s7, 4  ;;  %s181_s8 = int_to_ptr.hbm [resolvable:$true] %s180_s8 }
  0x18   : > { %s182_s9 = scalar_lea.hbm %s181_s8, 2  ;;  %p185_p1 = scmp.lt.s32.totalorder %s181_s8, %s319_s2 }
  0x19   : > { %p183_p0 = scmp.ne.s32.totalorder %s181_s8, %s182_s9  ;;  %p186_p2 = scmp.lt.s32.totalorder %s184_s12, %s182_s9 }
  0x1b   : > { %p187_p3 = por %p186_p2, %p185_p1 }
  0x1d   : > { %p188_p4 = pnand %p187_p3, %p183_p0 }
  0x1f   : > { %191 = shalt.err (!%p188_p4)  }
  0x20   : > { %s192_s15 = sshra.s32 %s55_s26, 4  ;;  %s254_s17 = smov [#allocation2]   ;;  %s193_s15 = int_to_ptr.vmem [resolvable:$true] %s192_s15 }
  0x21   : > { %s194_s16 = scalar_lea.vmem %s193_s15, 2  ;;  %s196_s18 = scalar_lea.vmem %s254_s17, 16 }
  0x22   : > { %p195_p5 = scmp.ne.s32.totalorder %s193_s15, %s194_s16  ;;  %p197_p6 = scmp.lt.s32.totalorder %s193_s15, [#allocation2] }
  0x23   : > { %p198_p7 = scmp.lt.s32.totalorder %s196_s18, %s194_s16 }
  0x25   : > { %p199_p8 = por %p198_p7, %p197_p6 }
  0x27   : > { %p200_p9 = pnand %p199_p8, %p195_p5 }
  0x29   : > { %203 = shalt.err (!%p200_p9)  }
  0x2a   : > { %s255_s19 = smov 128   ;;  %s256_s20 = smov 1  }
  0x2b   : > { %59 = dma.hbm_to_vmem [thread:$0]  %s53_s7, 32, %s55_s26, [#allocation3], %s255_s19, %s255_s19, %s256_s20 }
  0x2c   : > { %s39_s0 = sadd.s32 1, %s246_s0  }
  0x2d   : > { %p36_p10 = scmp.ge.s32.totalorder %s39_s0, 8  }
  0x2e   :  { %s248_s21 = smov (%p36_p10), 0  }
  0x2f   :  { %38 = sbr.rel (!%p36_p10) target bundleno = 12 (0xc), region = 44 }
  0x34 LB: > { %240 = dma.done.wait [#allocation3], 32  ;;  %s250_s21 = sphi %s248_s21, %s65_s21  }
  0x35   : > { %241 = vsyncadd [#allocation3], 4294967264  ;;  %s65_s21 = sadd.s32 1, %s250_s21  }
  0x36   : > { %p62_p11 = scmp.ge.s32.totalorder %s65_s21, 8  }
  0x37   :  { %v69_v0 = vld [vmem:[#allocation6] sm:$0xff] (%p62_p11)  ;;  %v73_v1 = vld [vmem:[#allocation2] sm:$0xff] (%p62_p11)  ;;  %v70_v2 = vld [vmem:[#allocation6 + $0x8] sm:$0xff] (%p62_p11)  ;;  %s257_s22 = smov (%p62_p11), [#allocation9]   ;;  %s88_s23 = sshll.u32 (%p62_p11), %s320_s3, 4  ;;  %s89_s23 = int_to_ptr.hbm [resolvable:$true] %s88_s23 }
  0x38   :  { %64 = sbr.rel (!%p62_p11) target bundleno = 52 (0x34), region = 55  ;;  %v71_v3 = vmul.f32 (%p62_p11), 0.7, %v69_v0  ;;  %v75_v4 = vmul.f32 (%p62_p11), 0.3, %v73_v1  ;;  %v74_v6 = vld [vmem:[#allocation2 + $0x8] sm:$0xff] (%p62_p11) }
  0x39   :  { %v72_v5 = vmul.f32 (%p62_p11), 0.7, %v70_v2  ;;  %s86_s0 = sshll.u32 (%p62_p11), %s257_s22, 4  ;;  %v76_v8 = vmul.f32 (%p62_p11), 0.3, %v74_v6  ;;  %s87_s0 = int_to_ptr.vmem [resolvable:$true] %s86_s0 }
  0x3a   :  { %v77_v7 = vadd.f32 (%p62_p11), %v75_v4, %v71_v3 }
  0x3b   :  { %v78_v9 = vadd.f32 (%p62_p11), %v76_v8, %v72_v5 }
  0x3c   :  { %79 = vst [vmem:[#allocation9] sm:$0xff] (%p62_p11), %v77_v7 }
  0x3d   :  { %80 = vst [vmem:[#allocation9 + $0x8] sm:$0xff] %v78_v9 }
  0x3e   :  { %91 = dma.vmem_to_hbm [thread:$0]  %s87_s0, 256, %s89_s23, [#allocation8]  }
  0x3f   :  { %242 = dma.done.wait [#allocation8], 256  }
  0x40   :  { %243 = vsyncadd [#allocation8], 4294967040 }
  0x41   :  { %96 = vsyncpa [#allocation7], 1 }
  0x42   :  { %97 = vsyncpa [#allocation8], 1 }
  0x43   :  { %98 = vsyncmov [#allocation3] }
  0x46   :  { %s99_s24 = vpop.sfrf %98 }
  0x47   :  { %p122_p12 = scmp.ne.s32.totalorder %s99_s24, 0 }
  0x49   :  { %103 = shalt.err (%p122_p12)  }

</bundles_post_ra>
